<compile_context>
chip_gen: v7x
topology: tpu7x:2x2x1
jax: 0.10.0
libtpu: 0.0.40
codegen_flags: <defaults>
</compile_context>

<pallas_src>
import functools

import jax
import jax.numpy as jnp
from jax.experimental import pallas as pl
from jax.experimental.pallas import tpu as pltpu


def _round_up(n: int, m: int) -> int:
    return ((n + m - 1) // m) * m


def _min_sublane(dtype) -> int:
    # Minimum second-to-last tile dim: 8 for 4-byte, 16 for 2-byte, 32 for 1-byte.
    return {4: 8, 2: 16, 1: 32}.get(jnp.dtype(dtype).itemsize, 8)


def _vmem_limit_bytes() -> int:
    """Generation-aware scoped-VMEM limit (v7x: 64 MiB/TC, v5e/v6e: 128 MiB)."""
    phys = 64 * 1024 * 1024
    try:
        info = pltpu.get_tpu_info()
        phys = int(getattr(info, "vmem_capacity_bytes", phys)) or phys
    except Exception:
        pass
    if phys < 32 * 1024 * 1024:           # defensive: nonsense answer
        phys = 64 * 1024 * 1024
    # Leave headroom for compiler-internal scratch; cap well under 128 MiB.
    return min((phys * 4) // 5, 100 * 1024 * 1024)


# --------------------------------------------------------------------------
# Resident-weight kernel: one grid axis over M tiles, weights stay in VMEM.
# --------------------------------------------------------------------------
def _ffn_resident_kernel(x_ref, w1_ref, b1_ref, w2_ref, b2_ref, o_ref):
    # linear1 + bias + ReLU   (MXU matmul, f32 accumulate; bias in f32)
    h = jnp.dot(x_ref[...], w1_ref[...], preferred_element_type=jnp.float32)
    h = jnp.maximum(h + b1_ref[...], 0.0)                       # (tm, d_ff) f32
    # TODO(synk): nn.Dropout(p=0.2) is identity in eval mode; training-mode
    # dropout (pltpu.prng_*) intentionally not applied here.
    y = jnp.dot(h.astype(w2_ref.dtype), w2_ref[...],
                preferred_element_type=jnp.float32)
    o_ref[...] = (y + b2_ref[...]).astype(o_ref.dtype)


# --------------------------------------------------------------------------
# Streamed-k fallback kernel: accumulate over d_ff tiles (weights too big to
# be VMEM-resident).
# --------------------------------------------------------------------------
def _ffn_streamed_kernel(x_ref, w1_ref, b1_ref, w2_ref, b2_ref, o_ref, acc_ref):
    k = pl.program_id(1)

    @pl.when(k == 0)
    def _():
        # Fold the second-layer bias into the accumulator init (added once).
        acc_ref[...] = jnp.broadcast_to(b2_ref[...], acc_ref.shape)

    h = jnp.dot(x_ref[...], w1_ref[...], preferred_element_type=jnp.float32)
    h = jnp.maximum(h + b1_ref[...], 0.0)                       # (tm, tf) f32
    # TODO(synk): dropout identity (eval mode) — see resident kernel.
    acc_ref[...] += jnp.dot(h.astype(w2_ref.dtype), w2_ref[...],
                            preferred_element_type=jnp.float32)

    @pl.when(k == pl.num_programs(1) - 1)
    def _():
        o_ref[...] = acc_ref[...].astype(o_ref.dtype)


@functools.partial(
    jax.jit,
    static_argnames=("tile_m", "tile_f", "compute_dtype", "force_streamed"))
def feed_forward(x, w1, b1, w2, b2, *, tile_m=512, tile_f=512,
                 compute_dtype=jnp.bfloat16, force_streamed=False):
    """x: (B, S, d_model) -> (B, S, d_model).

    w1: (d_model, d_ff), b1: (d_ff,), w2: (d_ff, d_model), b2: (d_model,).
    compute_dtype: MXU input dtype (bf16 default; accumulation is always f32).
    """
    B, S, d_model = x.shape
    d_ff = w1.shape[1]
    M = B * S

    cdtype = jnp.dtype(compute_dtype) if compute_dtype is not None else jnp.dtype(x.dtype)
    cbytes = cdtype.itemsize
    obytes = jnp.dtype(x.dtype).itemsize
    sub = max(_min_sublane(cdtype), _min_sublane(x.dtype))

    vmem_limit = _vmem_limit_bytes()
    budget = (vmem_limit * 3) // 4            # tiling budget, with headroom

    weight_bytes = 2 * d_model * d_ff * cbytes + (d_ff + d_model) * 4
    resident = (not force_streamed) and (weight_bytes <= budget // 2)

    # ---- pick tm (dtype-aware sublane multiple, shrunk to fit VMEM budget) --
    tm = _round_up(min(tile_m, _round_up(M, sub)), sub)

    def _fits_resident(tm_):
        x_out = 2 * tm_ * d_model * (cbytes + obytes)   # double-buffered x + out
        hidden = tm_ * d_ff * 4                         # f32 intermediate h
        return weight_bytes + x_out + hidden + tm_ * d_model * 4 <= budget

    # ---- streamed path: pick tf (multiple of 128, dividing d_ff if possible)
    tf = min(_round_up(tile_f, 128), _round_up(d_ff, 128))
    if d_ff % 128 == 0:
        while tf > 128 and d_ff % tf != 0:
            tf -= 128

    def _fits_streamed(tm_):
        x_out = 2 * tm_ * d_model * (cbytes + obytes)
        w_step = 2 * 2 * d_model * tf * cbytes          # dbl-buffered W1/W2 k-tiles
        bias = 2 * (tf + d_model) * 4
        hidden = tm_ * tf * 4
        acc = tm_ * d_model * 4
        return x_out + w_step + bias + hidden + acc <= budget

    fits = _fits_resident if resident else _fits_streamed
    while tm > sub and not fits(tm):
        tm = max(sub, _round_up(tm // 2, sub))

    M_pad = _round_up(M, tm)
    grid_m = M_pad // tm

    # ---- flatten + cast; only M may need zero-padding on the resident path --
    x2d = x.reshape(M, d_model).astype(cdtype)
    if M_pad != M:
        x2d = jnp.pad(x2d, ((0, M_pad - M), (0, 0)))
    b2f = b2.reshape(1, d_model).astype(jnp.float32)

    if resident:
        w1c = w1.astype(cdtype)
        w2c = w2.astype(cdtype)
        b1f = b1.reshape(1, d_ff).astype(jnp.float32)

        out2d = pl.pallas_call(
            _ffn_resident_kernel,
            out_shape=jax.ShapeDtypeStruct((M_pad, d_model), x.dtype),
            grid_spec=pltpu.PrefetchScalarGridSpec(
                num_scalar_prefetch=0,
                grid=(grid_m,),
                in_specs=[
                    pl.BlockSpec((tm, d_model), lambda i: (i, 0)),     # x tile
                    pl.BlockSpec((d_model, d_ff), lambda i: (0, 0)),   # W1 (resident)
                    pl.BlockSpec((1, d_ff), lambda i: (0, 0)),         # b1 (resident)
                    pl.BlockSpec((d_ff, d_model), lambda i: (0, 0)),   # W2 (resident)
                    pl.BlockSpec((1, d_model), lambda i: (0, 0)),      # b2 (resident)
                ],
                out_specs=pl.BlockSpec((tm, d_model), lambda i: (i, 0)),
            ),
            compiler_params=pltpu.CompilerParams(
                dimension_semantics=("parallel",),
                vmem_limit_bytes=vmem_limit,
            ),
        )(x2d, w1c, b1f, w2c, b2f)
    else:
        # Streamed-k fallback: zero-pad d_ff only if it is not a 128-multiple
        # (padded hidden cols have zero W1 cols / zero b1 / zero W2 rows).
        F_pad = _round_up(d_ff, tf)
        w1c = w1.astype(cdtype)
        w2c = w2.astype(cdtype)
        b1f = b1.astype(jnp.float32)
        if F_pad != d_ff:
            w1c = jnp.pad(w1c, ((0, 0), (0, F_pad - d_ff)))
            b1f = jnp.pad(b1f, ((0, F_pad - d_ff),))
            w2c = jnp.pad(w2c, ((0, F_pad - d_ff), (0, 0)))
        b1f = b1f.reshape(1, F_pad)

        out2d = pl.pallas_call(
            _ffn_streamed_kernel,
            out_shape=jax.ShapeDtypeStruct((M_pad, d_model), x.dtype),
            grid_spec=pltpu.PrefetchScalarGridSpec(
                num_scalar_prefetch=0,
                grid=(grid_m, F_pad // tf),
                in_specs=[
                    pl.BlockSpec((tm, d_model), lambda i, k: (i, 0)),   # x tile
                    pl.BlockSpec((d_model, tf), lambda i, k: (0, k)),   # W1 k-tile
                    pl.BlockSpec((1, tf), lambda i, k: (0, k)),         # b1 k-tile
                    pl.BlockSpec((tf, d_model), lambda i, k: (k, 0)),   # W2 k-tile
                    pl.BlockSpec((1, d_model), lambda i, k: (0, 0)),    # b2
                ],
                out_specs=pl.BlockSpec((tm, d_model), lambda i, k: (i, 0)),
                scratch_shapes=[pltpu.VMEM((tm, d_model), jnp.float32)],
            ),
            compiler_params=pltpu.CompilerParams(
                dimension_semantics=("parallel", "arbitrary"),
                vmem_limit_bytes=vmem_limit,
            ),
        )(x2d, w1c, b1f, w2c, b2f)

    return out2d[:M].reshape(B, S, d_model)


def init_params(key, d_model, d_ff, dtype=jnp.float32):
    """Deterministic init mimicking nn.Linear default (U[-1/sqrt(fan_in), +])."""
    k1, k2, k3, k4 = jax.random.split(key, 4)
    lim1 = 1.0 / (d_model ** 0.5)
    lim2 = 1.0 / (d_ff ** 0.5)
    w1 = jax.random.uniform(k1, (d_model, d_ff), dtype, -lim1, lim1)
    b1 = jax.random.uniform(k2, (d_ff,), dtype, -lim1, lim1)
    w2 = jax.random.uniform(k3, (d_ff, d_model), dtype, -lim2, lim2)
    b2 = jax.random.uniform(k4, (d_model,), dtype, -lim2, lim2)
    return w1, b1, w2, b2


if __name__ == "__main__":
    # TransformerConfig defaults: d_model=256, d_ff=1024; small batch=2, seq=8.
    B, S, d_model, d_ff = 2, 8, 256, 1024

    key = jax.random.PRNGKey(0)
    kx, kp = jax.random.split(key)
    x = jax.random.normal(kx, (B, S, d_model), jnp.float32)
    w1, b1, w2, b2 = init_params(kp, d_model, d_ff)

    # Pure-JAX reference (eval-mode FeedForward forward).
    ref = jnp.maximum(x @ w1 + b1, 0.0) @ w2 + b2

    # 1) Default fast path: resident weights, bf16 MXU, f32 accumulation.
    out = jax.block_until_ready(feed_forward(x, w1, b1, w2, b2))
    assert out.shape == (B, S, d_model)
    assert jnp.allclose(out, ref, atol=2e-2, rtol=2e-2), "bf16 path mismatch"

    # 2) Exact f32 path (tight tolerance).
    out_f32 = jax.block_until_ready(
        feed_forward(x, w1, b1, w2, b2, compute_dtype=jnp.float32))
    assert jnp.allclose(out_f32, ref, atol=1e-3, rtol=1e-3), "f32 path mismatch"

    # 3) Streamed-k fallback (used when weights exceed the VMEM budget).
    out_stream = jax.block_until_ready(
        feed_forward(x, w1, b1, w2, b2, compute_dtype=jnp.float32,
                     force_streamed=True))
    assert jnp.allclose(out_stream, ref, atol=1e-3, rtol=1e-3), "streamed mismatch"

    print("KERNEL_OK")
</pallas_src>

<mosaic_0001>
module attributes {stable_mosaic.version = 11 : i64} {
  func.func @_ffn_resident_kernel(%arg0: i32, %arg1: memref<16x256xbf16, #tpu.memory_space<vmem>>, %arg2: memref<256x1024xbf16, #tpu.memory_space<vmem>>, %arg3: memref<1x1024xf32, #tpu.memory_space<vmem>>, %arg4: memref<1024x256xbf16, #tpu.memory_space<vmem>>, %arg5: memref<1x256xf32, #tpu.memory_space<vmem>>, %arg6: memref<16x256xf32, #tpu.memory_space<vmem>>) attributes {dimension_semantics = [#tpu.dimension_semantics<parallel>], iteration_bounds = array<i64: 1>, scalar_prefetch = 0 : i64, scratch_operands = 0 : i64, tpu.core_type = #tpu.core_type<tc>, window_params = [{transform_indices = @transform_0, window_bounds = array<i64: 16, 256>}, {pipeline_mode = #tpu.pipeline_mode<synchronous>, transform_indices = @transform_1, window_bounds = array<i64: 256, 1024>}, {pipeline_mode = #tpu.pipeline_mode<synchronous>, transform_indices = @transform_2, window_bounds = array<i64: 1, 1024>}, {pipeline_mode = #tpu.pipeline_mode<synchronous>, transform_indices = @transform_3, window_bounds = array<i64: 1024, 256>}, {pipeline_mode = #tpu.pipeline_mode<synchronous>, transform_indices = @transform_4, window_bounds = array<i64: 1, 256>}, {transform_indices = @transform_5, window_bounds = array<i64: 16, 256>}]} {
    %c0 = arith.constant 0 : index
    %c0_0 = arith.constant 0 : index
    %0 = vector.load %arg1[%c0, %c0_0] : memref<16x256xbf16, #tpu.memory_space<vmem>>, vector<16x256xbf16>
    %c0_1 = arith.constant 0 : index
    %c0_2 = arith.constant 0 : index
    %1 = vector.load %arg2[%c0_1, %c0_2] : memref<256x1024xbf16, #tpu.memory_space<vmem>>, vector<256x1024xbf16>
    %cst = arith.constant dense<0.000000e+00> : vector<16x1024xf32>
    %2 = tpu.matmul %0, %1, %cst {dimension_numbers = #tpu.dot_dimension_numbers<[1], [0], [0], [1], [0, 0, 1, 1], [], []>} : vector<16x256xbf16>, vector<256x1024xbf16>, vector<16x1024xf32> -> vector<16x1024xf32>
    %c0_3 = arith.constant 0 : index
    %c0_4 = arith.constant 0 : index
    %3 = vector.load %arg3[%c0_3, %c0_4] : memref<1x1024xf32, #tpu.memory_space<vmem>>, vector<1x1024xf32>
    %4 = vector.broadcast %3 : vector<1x1024xf32> to vector<16x1024xf32>
    %5 = arith.addf %2, %4 : vector<16x1024xf32>
    %cst_5 = arith.constant 0.000000e+00 : f32
    %6 = vector.broadcast %cst_5 : f32 to vector<16x1024xf32>
    %7 = arith.maximumf %5, %6 : vector<16x1024xf32>
    %8 = arith.truncf %7 : vector<16x1024xf32> to vector<16x1024xbf16>
    %c0_6 = arith.constant 0 : index
    %c0_7 = arith.constant 0 : index
    %9 = vector.load %arg4[%c0_6, %c0_7] : memref<1024x256xbf16, #tpu.memory_space<vmem>>, vector<1024x256xbf16>
    %cst_8 = arith.constant dense<0.000000e+00> : vector<16x256xf32>
    %10 = tpu.matmul %8, %9, %cst_8 {dimension_numbers = #tpu.dot_dimension_numbers<[1], [0], [0], [1], [0, 0, 1, 1], [], []>} : vector<16x1024xbf16>, vector<1024x256xbf16>, vector<16x256xf32> -> vector<16x256xf32>
    %c0_9 = arith.constant 0 : index
    %c0_10 = arith.constant 0 : index
    %11 = vector.load %arg5[%c0_9, %c0_10] : memref<1x256xf32, #tpu.memory_space<vmem>>, vector<1x256xf32>
    %12 = vector.broadcast %11 : vector<1x256xf32> to vector<16x256xf32>
    %13 = arith.addf %10, %12 : vector<16x256xf32>
    %c0_11 = arith.constant 0 : index
    %c0_12 = arith.constant 0 : index
    %14 = vector.load %arg6[%c0_11, %c0_12] : memref<16x256xf32, #tpu.memory_space<vmem>>, vector<16x256xf32>
    tpu.vector_store %arg6[%c0_11, %c0_12], %13 {strides = array<i32>} : memref<16x256xf32, #tpu.memory_space<vmem>>, vector<16x256xf32>,
    return
  }
  func.func @transform_0(%arg0: i32) -> (i32, i32) {
    %c0_i32 = arith.constant 0 : i32
    %c0_i32_0 = arith.constant 0 : i32
    return %arg0, %c0_i32 : i32, i32
  }
  func.func @transform_1(%arg0: i32) -> (i32, i32) {
    %c0_i32 = arith.constant 0 : i32
    %c0_i32_0 = arith.constant 0 : i32
    %c0_i32_1 = arith.constant 0 : i32
    return %c0_i32, %c0_i32_0 : i32, i32
  }
  func.func @transform_2(%arg0: i32) -> (i32, i32) {
    %c0_i32 = arith.constant 0 : i32
    %c0_i32_0 = arith.constant 0 : i32
    %c0_i32_1 = arith.constant 0 : i32
    return %c0_i32, %c0_i32_0 : i32, i32
  }
  func.func @transform_3(%arg0: i32) -> (i32, i32) {
    %c0_i32 = arith.constant 0 : i32
    %c0_i32_0 = arith.constant 0 : i32
    %c0_i32_1 = arith.constant 0 : i32
    return %c0_i32, %c0_i32_0 : i32, i32
  }
  func.func @transform_4(%arg0: i32) -> (i32, i32) {
    %c0_i32 = arith.constant 0 : i32
    %c0_i32_0 = arith.constant 0 : i32
    %c0_i32_1 = arith.constant 0 : i32
    return %c0_i32, %c0_i32_0 : i32, i32
  }
  func.func @transform_5(%arg0: i32) -> (i32, i32) {
    %c0_i32 = arith.constant 0 : i32
    %c0_i32_0 = arith.constant 0 : i32
    return %arg0, %c0_i32 : i32, i32
  }
}

</mosaic_0001>

<bundles_post_ra>
// kernel: feed_forward.1
= control target key start
LH: loop header
LB: loop body
LE: loop exit
PB: predicated region body
PF: predicated region fallthrough
CT: control target
= control target key end

     0   :  { %s3372_s0 = inlined_call_operand.vmem [shape: bf16[16,256], index: 0, kind: input, shape index: {}]   ;;  %s3373_s1 = inlined_call_operand.vmem [shape: bf16[256,1024], index: 1, kind: input, shape index: {}]   ;;  %s3374_s2 = inlined_call_operand.vmem [shape: f32[1,1024], index: 2, kind: input, shape index: {}]   ;;  %s3375_s3 = inlined_call_operand.vmem [shape: bf16[1024,256], index: 3, kind: input, shape index: {}]   ;;  %s3376_s4 = inlined_call_operand.vmem [shape: f32[1,256], index: 4, kind: input, shape index: {}]   ;;  %s3377_s5 = inlined_call_operand.hbm [shape: f32[16,256], index: 5, kind: output, shape index: {}]  }
   0x1   :  { %v23_v0 = vld [vmem:[%s3373_s1] sm:$0xff]  ;;  %v24_v63 = vld [vmem:[%s3373_s1 + $0x8] sm:$0xff] }
   0x2   :  { %v27_v1 = vld [vmem:[%s3373_s1 + $0x20] sm:$0xff] }
   0x3   :  { %v31_v2 = vld [vmem:[%s3373_s1 + $0x40] sm:$0xff]  ;;  %v2014_v3 = vcombine.high %v23_v0, %v27_v1  ;;  %v2013_v4 = vcombine.low %v23_v0, %v27_v1  ;;  %v28_v0 = vld [vmem:[%s3373_s1 + $0x28] sm:$0xff] }
   0x4   :  { %v35_v5 = vld [vmem:[%s3373_s1 + $0x60] sm:$0xff] }
   0x5   :  { %v2022_v6 = vcombine.high %v31_v2, %v35_v5  ;;  %v39_v7 = vld [vmem:[%s3373_s1 + $0x80] sm:$0xff]  ;;  %843 = vmatprep.subr.bf16.mxu1 %v2014_v3  ;;  %v2021_v9 = vcombine.low %v31_v2, %v35_v5  ;;  %v32_v3 = vld [vmem:[%s3373_s1 + $0x48] sm:$0xff] }
   0x6   :  { %v43_v8 = vld [vmem:[%s3373_s1 + $0xa0] sm:$0xff]  ;;  %844 = vmatpush1.bf16.msra.mxu1 %v2013_v4  ;;  %v36_v4 = vld [vmem:[%s3373_s1 + $0x68] sm:$0xff] }
   0x7   :  { %845 = vmatprep.subr.bf16.mxu1 %v2022_v6  ;;  %v2030_v10 = vcombine.high %v39_v7, %v43_v8  ;;  %v47_v11 = vld [vmem:[%s3373_s1 + $0xc0] sm:$0xff]  ;;  %v2029_v13 = vcombine.low %v39_v7, %v43_v8  ;;  %v2016_v6 = vcombine.high %v24_v63, %v28_v0  ;;  %v2015_v7 = vcombine.low %v24_v63, %v28_v0  ;;  %v40_v8 = vld [vmem:[%s3373_s1 + $0x88] sm:$0xff] }
   0x8   :  { %v51_v12 = vld [vmem:[%s3373_s1 + $0xe0] sm:$0xff] }
   0x9   :  { %v2038_v14 = vcombine.high %v47_v11, %v51_v12  ;;  %v55_v15 = vld [vmem:[%s3373_s1 + $0x100] sm:$0xff]  ;;  %v2037_v18 = vcombine.low %v47_v11, %v51_v12  ;;  %v2023_v11 = vcombine.low %v32_v3, %v36_v4  ;;  %v48_v12 = vld [vmem:[%s3373_s1 + $0xc8] sm:$0xff] }
   0xa   :  { %846 = vmatpush1.bf16.msra.mxu1 %v2021_v9  ;;  %v59_v16 = vld [vmem:[%s3373_s1 + $0x120] sm:$0xff]  ;;  %v44_v9 = vld [vmem:[%s3373_s1 + $0xa8] sm:$0xff] }
   0xb   :  { %847 = vmatprep.subr.bf16.mxu1 %v2030_v10  ;;  %v2573_v17 = vld [vmem:[%s3372_s0 + $0x4] ss:$8 sps:$4 sm:$0xff]   ;;  %v2046_v19 = vcombine.high %v55_v15, %v59_v16  ;;  %v2045_v22 = vcombine.low %v55_v15, %v59_v16  ;;  %v2657_v5 = vld [vmem:[%s3372_s0] ss:$8 sps:$4 sm:$0xff]   ;;  %v2024_v10 = vcombine.high %v32_v3, %v36_v4  ;;  %v2031_v15 = vcombine.low %v40_v8, %v44_v9 }
   0xc   :  { %875 = vmatprep.mubr.bf16.mxu1 %v2573_v17  ;;  %v63_v20 = vld [vmem:[%s3373_s1 + $0x140] sm:$0xff]  ;;  %v56_v16 = vld [vmem:[%s3373_s1 + $0x108] sm:$0xff] }
   0xd   :  { %v67_v21 = vld [vmem:[%s3373_s1 + $0x160] sm:$0xff] }
   0xe   :  { %848 = vmatpush1.bf16.msra.mxu1 %v2029_v13  ;;  %v2054_v23 = vcombine.high %v63_v20, %v67_v21  ;;  %v71_v24 = vld [vmem:[%s3373_s1 + $0x180] sm:$0xff]  ;;  %v2053_v26 = vcombine.low %v63_v20, %v67_v21  ;;  %v52_v13 = vld [vmem:[%s3373_s1 + $0xe8] sm:$0xff] }
   0xf   :  { %849 = vmatprep.subr.bf16.mxu1 %v2038_v14  ;;  %v75_v25 = vld [vmem:[%s3373_s1 + $0x1a0] sm:$0xff]  ;;  %v2032_v14 = vcombine.high %v40_v8, %v44_v9  ;;  %v2039_v20 = vcombine.low %v48_v12, %v52_v13  ;;  %v64_v21 = vld [vmem:[%s3373_s1 + $0x148] sm:$0xff] }
  0x10   :  { %v2062_v27 = vcombine.high %v71_v24, %v75_v25  ;;  %v79_v28 = vld [vmem:[%s3373_s1 + $0x1c0] sm:$0xff]  ;;  %v2061_v30 = vcombine.low %v71_v24, %v75_v25 }
  0x11   :  { %v83_v29 = vld [vmem:[%s3373_s1 + $0x1e0] sm:$0xff] }
  0x12   :  { %850 = vmatpush1.bf16.msra.mxu1 %v2037_v18  ;;  %v2070_v31 = vcombine.high %v79_v28, %v83_v29  ;;  %v87_v32 = vld [vmem:[%s3373_s1 + $0x200] sm:$0xff]  ;;  %v2069_v34 = vcombine.low %v79_v28, %v83_v29  ;;  %v60_v18 = vld [vmem:[%s3373_s1 + $0x128] sm:$0xff] }
  0x13   :  { %851 = vmatprep.subr.bf16.mxu1 %v2046_v19  ;;  %v91_v33 = vld [vmem:[%s3373_s1 + $0x220] sm:$0xff]  ;;  %v2040_v19 = vcombine.high %v48_v12, %v52_v13 }
  0x14   :  { %v95_v35 = vld [vmem:[%s3373_s1 + $0x240] sm:$0xff]  ;;  %v2078_v37 = vcombine.high %v87_v32, %v91_v33  ;;  %v2077_v38 = vcombine.low %v87_v32, %v91_v33 }
  0x15   :  { %v99_v36 = vld [vmem:[%s3373_s1 + $0x260] sm:$0xff] }
  0x16   :  { %852 = vmatpush1.bf16.msra.mxu1 %v2045_v22  ;;  %v103_v39 = vld [vmem:[%s3373_s1 + $0x280] sm:$0xff]  ;;  %v2086_v41 = vcombine.high %v95_v35, %v99_v36  ;;  %v2085_v42 = vcombine.low %v95_v35, %v99_v36  ;;  %v68_v22 = vld [vmem:[%s3373_s1 + $0x168] sm:$0xff] }
  0x17   :  { %853 = vmatprep.subr.bf16.mxu1 %v2054_v23  ;;  %v107_v40 = vld [vmem:[%s3373_s1 + $0x2a0] sm:$0xff]  ;;  %v2048_v23 = vcombine.high %v56_v16, %v60_v18 }
  0x18   :  { %v111_v43 = vld [vmem:[%s3373_s1 + $0x2c0] sm:$0xff]  ;;  %v2094_v45 = vcombine.high %v103_v39, %v107_v40  ;;  %v2093_v46 = vcombine.low %v103_v39, %v107_v40 }
  0x19   :  { %v115_v44 = vld [vmem:[%s3373_s1 + $0x2e0] sm:$0xff] }
  0x1a   :  { %854 = vmatpush1.bf16.msra.mxu1 %v2053_v26  ;;  %v119_v47 = vld [vmem:[%s3373_s1 + $0x300] sm:$0xff]  ;;  %v2102_v49 = vcombine.high %v111_v43, %v115_v44  ;;  %v2101_v50 = vcombine.low %v111_v43, %v115_v44 }
  0x1b   :  { %855 = vmatprep.subr.bf16.mxu1 %v2062_v27  ;;  %v123_v48 = vld [vmem:[%s3373_s1 + $0x320] sm:$0xff] }
  0x1c   :  { %v127_v51 = vld [vmem:[%s3373_s1 + $0x340] sm:$0xff]  ;;  %v2110_v53 = vcombine.high %v119_v47, %v123_v48  ;;  %v2109_v54 = vcombine.low %v119_v47, %v123_v48 }
  0x1d   :  { %v131_v52 = vld [vmem:[%s3373_s1 + $0x360] sm:$0xff] }
  0x1e   :  { %856 = vmatpush1.bf16.msra.mxu1 %v2061_v30  ;;  %v135_v55 = vld [vmem:[%s3373_s1 + $0x380] sm:$0xff]  ;;  %v2118_v57 = vcombine.high %v127_v51, %v131_v52  ;;  %v2117_v58 = vcombine.low %v127_v51, %v131_v52 }
  0x1f   :  { %857 = vmatprep.subr.bf16.mxu1 %v2070_v31  ;;  %v139_v56 = vld [vmem:[%s3373_s1 + $0x3a0] sm:$0xff] }
  0x20   :  { %v143_v59 = vld [vmem:[%s3373_s1 + $0x3c0] sm:$0xff]  ;;  %v2126_v61 = vcombine.high %v135_v55, %v139_v56  ;;  %v2125_v62 = vcombine.low %v135_v55, %v139_v56 }
  0x21   :  { %v147_v60 = vld [vmem:[%s3373_s1 + $0x3e0] sm:$0xff] }
  0x22   :  { %858 = vmatpush1.bf16.msra.mxu1 %v2069_v34  ;;  %v2134_v1 = vcombine.high %v143_v59, %v147_v60  ;;  %v2133_v2 = vcombine.low %v143_v59, %v147_v60 }
  0x23   :  { %859 = vmatprep.subr.bf16.mxu1 %v2078_v37 }
  0x26   :  { %860 = vmatpush1.bf16.msra.mxu1 %v2077_v38 }
  0x27   :  { %861 = vmatprep.subr.bf16.mxu1 %v2086_v41 }
  0x2a   :  { %862 = vmatpush1.bf16.msra.mxu1 %v2085_v42 }
  0x2b   :  { %863 = vmatprep.subr.bf16.mxu1 %v2094_v45 }
  0x2e   :  { %864 = vmatpush1.bf16.msra.mxu1 %v2093_v46 }
  0x2f   :  { %865 = vmatprep.subr.bf16.mxu1 %v2102_v49 }
  0x32   :  { %866 = vmatpush1.bf16.msra.mxu1 %v2101_v50 }
  0x33   :  { %867 = vmatprep.subr.bf16.mxu1 %v2110_v53 }
  0x36   :  { %868 = vmatpush1.bf16.msra.mxu1 %v2109_v54 }
  0x37   :  { %869 = vmatprep.subr.bf16.mxu1 %v2118_v57 }
  0x3a   :  { %870 = vmatpush1.bf16.msra.mxu1 %v2117_v58 }
  0x3b   :  { %871 = vmatprep.subr.bf16.mxu1 %v2126_v61 }
  0x3e   :  { %872 = vmatpush1.bf16.msra.mxu1 %v2125_v62 }
  0x3f   :  { %873 = vmatprep.subr.bf16.mxu1 %v2134_v1 }
  0x42   :  { %874 = vmatpush1.bf16.msra.mxu1 %v2133_v2 }
  0x43   :  { %886 = vmatprep.subr.bf16.mxu1 %v2016_v6 }
  0x45   :  { %876 = vmatmul.mubr.bf16.vlgmr.msra.gmra.mrb[0].mxu1 %v2657_v5 }
  0x46   :  { %887 = vmatpush1.bf16.msra.mxu1 %v2015_v7  ;;  %918 = vmatprep.mubr.bf16.mxu1 %v2573_v17 }
  0x47   :  { %888 = vmatprep.subr.bf16.mxu1 %v2024_v10 }
  0x4a   :  { %889 = vmatpush1.bf16.msra.mxu1 %v2023_v11 }
  0x4b   :  { %890 = vmatprep.subr.bf16.mxu1 %v2032_v14 }
  0x4e   :  { %891 = vmatpush1.bf16.msra.mxu1 %v2031_v15 }
  0x4f   :  { %892 = vmatprep.subr.bf16.mxu1 %v2040_v19 }
  0x50   :  { %10 = vsyncpa [#allocation3], 0  ;;  %v2047_v24 = vcombine.low %v56_v16, %v60_v18  ;;  %v2056_v25 = vcombine.high %v64_v21, %v68_v22  ;;  %v72_v26 = vld [vmem:[%s3373_s1 + $0x188] sm:$0xff]  ;;  %v2055_v28 = vcombine.low %v64_v21, %v68_v22  ;;  %v2294_v46 = vld [vmem:[%s3375_s3 + $0x14] ss:$8 sps:$4 sm:$0xff]  }
  0x51   :  { %v76_v27 = vld [vmem:[%s3373_s1 + $0x1a8] sm:$0xff]  ;;  %v2296_v48 = vld [vmem:[%s3375_s3 + $0x10] ss:$8 sps:$4 sm:$0xff]   ;;  %v2300_v58 = vld [vmem:[%s3375_s3 + $0x34] ss:$8 sps:$4 sm:$0xff]  }
  0x52   :  { %893 = vmatpush1.bf16.msra.mxu1 %v2039_v20  ;;  %v2064_v29 = vcombine.high %v72_v26, %v76_v27  ;;  %v80_v30 = vld [vmem:[%s3373_s1 + $0x1c8] sm:$0xff]  ;;  %v2063_v32 = vcombine.low %v72_v26, %v76_v27  ;;  %v2302_v60 = vld [vmem:[%s3375_s3 + $0x30] ss:$8 sps:$4 sm:$0xff]   ;;  %v2306_v7 = vld [vmem:[%s3375_s3 + $0x54] ss:$8 sps:$4 sm:$0xff]  }
  0x53   :  { %894 = vmatprep.subr.bf16.mxu1 %v2048_v23  ;;  %v84_v31 = vld [vmem:[%s3373_s1 + $0x1e8] sm:$0xff]  ;;  %v2308_v9 = vld [vmem:[%s3375_s3 + $0x50] ss:$8 sps:$4 sm:$0xff]   ;;  %v2312_v20 = vld [vmem:[%s3375_s3 + $0x74] ss:$8 sps:$4 sm:$0xff]  }
  0x54   :  { %v2072_v33 = vcombine.high %v80_v30, %v84_v31  ;;  %v88_v34 = vld [vmem:[%s3373_s1 + $0x208] sm:$0xff]  ;;  %v2071_v36 = vcombine.low %v80_v30, %v84_v31  ;;  %v25_v18 = vld [vmem:[%s3373_s1 + $0x10] sm:$0xff] }
  0x55   :  { %v92_v35 = vld [vmem:[%s3373_s1 + $0x228] sm:$0xff]  ;;  %v29_v19 = vld [vmem:[%s3373_s1 + $0x30] sm:$0xff] }
  0x56   :  { %895 = vmatpush1.bf16.msra.mxu1 %v2047_v24  ;;  %v2080_v37 = vcombine.high %v88_v34, %v92_v35  ;;  %v96_v38 = vld [vmem:[%s3373_s1 + $0x248] sm:$0xff]  ;;  %v2079_v41 = vcombine.low %v88_v34, %v92_v35  ;;  %v2314_v22 = vld [vmem:[%s3375_s3 + $0x70] ss:$8 sps:$4 sm:$0xff]   ;;  %v2018_v23 = vcombine.high %v25_v18, %v29_v19  ;;  %v2017_v27 = vcombine.low %v25_v18, %v29_v19 }
  0x57   :  { %896 = vmatprep.subr.bf16.mxu1 %v2056_v25  ;;  %v100_v39 = vld [vmem:[%s3373_s1 + $0x268] sm:$0xff]  ;;  %v33_v24 = vld [vmem:[%s3373_s1 + $0x50] sm:$0xff] }
  0x58   :  { %v2291_v40 = vld [vmem:[%s3375_s3 + $0x4] ss:$8 sps:$4 sm:$0xff]   ;;  %v2293_v42 = vld [vmem:[%s3375_s3] ss:$8 sps:$4 sm:$0xff]   ;;  %v2088_v43 = vcombine.high %v96_v38, %v100_v39  ;;  %v2087_v47 = vcombine.low %v96_v38, %v100_v39  ;;  %v37_v25 = vld [vmem:[%s3373_s1 + $0x70] sm:$0xff] }
  0x59   :  { %1819 = vmatprep.subr.bf16.mxu0 %v2291_v40  ;;  %v104_v44 = vld [vmem:[%s3373_s1 + $0x288] sm:$0xff]  ;;  %v41_v30 = vld [vmem:[%s3373_s1 + $0x90] sm:$0xff]  ;;  %v2025_v35 = vcombine.low %v33_v24, %v37_v25 }
  0x5a   :  { %897 = vmatpush1.bf16.msra.mxu1 %v2055_v28  ;;  %v108_v45 = vld [vmem:[%s3373_s1 + $0x2a8] sm:$0xff]  ;;  %1820 = vmatpush1.bf16.msra.mxu0 %v2293_v42  ;;  %v45_v31 = vld [vmem:[%s3373_s1 + $0xb0] sm:$0xff] }
  0x5b   :  { %898 = vmatprep.subr.bf16.mxu1 %v2064_v29  ;;  %v2096_v49 = vcombine.high %v104_v44, %v108_v45  ;;  %1821 = vmatprep.subr.bf16.mxu0 %v2294_v46  ;;  %v112_v50 = vld [vmem:[%s3373_s1 + $0x2c8] sm:$0xff]  ;;  %v2095_v53 = vcombine.low %v104_v44, %v108_v45  ;;  %v2026_v29 = vcombine.high %v33_v24, %v37_v25  ;;  %v53_v38 = vld [vmem:[%s3373_s1 + $0xf0] sm:$0xff] }
  0x5c   :  { %v116_v51 = vld [vmem:[%s3373_s1 + $0x2e8] sm:$0xff]  ;;  %v2324_v40 = vld [vmem:[%s3375_s3 + $0xb4] ss:$8 sps:$4 sm:$0xff]   ;;  %v2326_v45 = vld [vmem:[%s3375_s3 + $0xb0] ss:$8 sps:$4 sm:$0xff]  }
  0x5d   :  { %v2297_v52 = vld [vmem:[%s3375_s3 + $0x24] ss:$8 sps:$4 sm:$0xff]   ;;  %v2299_v54 = vld [vmem:[%s3375_s3 + $0x20] ss:$8 sps:$4 sm:$0xff]   ;;  %v2104_v55 = vcombine.high %v112_v50, %v116_v51  ;;  %v2103_v59 = vcombine.low %v112_v50, %v116_v51  ;;  %v61_v44 = vld [vmem:[%s3373_s1 + $0x130] sm:$0xff] }
  0x5e   :  { %899 = vmatpush1.bf16.msra.mxu1 %v2063_v32  ;;  %1822 = vmatpush1.bf16.msra.mxu0 %v2296_v48  ;;  %v120_v56 = vld [vmem:[%s3373_s1 + $0x308] sm:$0xff]  ;;  %v2318_v32 = vld [vmem:[%s3375_s3 + $0x94] ss:$8 sps:$4 sm:$0xff]  }
  0x5f   :  { %900 = vmatprep.subr.bf16.mxu1 %v2072_v33  ;;  %1823 = vmatprep.subr.bf16.mxu0 %v2297_v52  ;;  %v124_v57 = vld [vmem:[%s3373_s1 + $0x328] sm:$0xff]  ;;  %v2320_v33 = vld [vmem:[%s3375_s3 + $0x90] ss:$8 sps:$4 sm:$0xff]   ;;  %v2330_v52 = vld [vmem:[%s3375_s3 + $0xd4] ss:$8 sps:$4 sm:$0xff]  }
  0x60   :  { %v2112_v61 = vcombine.high %v120_v56, %v124_v57  ;;  %v128_v62 = vld [vmem:[%s3373_s1 + $0x348] sm:$0xff]  ;;  %v2111_v1 = vcombine.low %v120_v56, %v124_v57  ;;  %v69_v50 = vld [vmem:[%s3373_s1 + $0x170] sm:$0xff] }
  0x61   :  { %v132_v63 = vld [vmem:[%s3373_s1 + $0x368] sm:$0xff]  ;;  %v77_v56 = vld [vmem:[%s3373_s1 + $0x1b0] sm:$0xff] }
  0x62   :  { %901 = vmatpush1.bf16.msra.mxu1 %v2071_v36  ;;  %1824 = vmatpush1.bf16.msra.mxu0 %v2299_v54  ;;  %v2303_v0 = vld [vmem:[%s3375_s3 + $0x44] ss:$8 sps:$4 sm:$0xff]   ;;  %v2305_v2 = vld [vmem:[%s3375_s3 + $0x40] ss:$8 sps:$4 sm:$0xff]   ;;  %v2120_v3 = vcombine.high %v128_v62, %v132_v63  ;;  %v2119_v8 = vcombine.low %v128_v62, %v132_v63  ;;  %v2034_v36 = vcombine.high %v41_v30, %v45_v31  ;;  %v113_v19 = vld [vmem:[%s3373_s1 + $0x2d0] sm:$0xff] }
  0x63   :  { %902 = vmatprep.subr.bf16.mxu1 %v2080_v37  ;;  %1825 = vmatprep.subr.bf16.mxu0 %v2300_v58  ;;  %v136_v4 = vld [vmem:[%s3373_s1 + $0x388] sm:$0xff]  ;;  %v49_v37 = vld [vmem:[%s3373_s1 + $0xd0] sm:$0xff] }
  0x64   :  { %v140_v6 = vld [vmem:[%s3373_s1 + $0x3a8] sm:$0xff]  ;;  %v2042_v42 = vcombine.high %v49_v37, %v53_v38  ;;  %v2332_v58 = vld [vmem:[%s3375_s3 + $0xd0] ss:$8 sps:$4 sm:$0xff]  }
  0x65   :  { %v2128_v10 = vcombine.high %v136_v4, %v140_v6  ;;  %v144_v11 = vld [vmem:[%s3373_s1 + $0x3c8] sm:$0xff]  ;;  %v2127_v14 = vcombine.low %v136_v4, %v140_v6  ;;  %v2336_v4 = vld [vmem:[%s3375_s3 + $0xf4] ss:$8 sps:$4 sm:$0xff]  }
  0x66   :  { %903 = vmatpush1.bf16.msra.mxu1 %v2079_v41  ;;  %1826 = vmatpush1.bf16.msra.mxu0 %v2302_v60  ;;  %v148_v12 = vld [vmem:[%s3373_s1 + $0x3e8] sm:$0xff]  ;;  %v2033_v41 = vcombine.low %v41_v30, %v45_v31  ;;  %v81_v60 = vld [vmem:[%s3373_s1 + $0x1d0] sm:$0xff] }
  0x67   :  { %904 = vmatprep.subr.bf16.mxu1 %v2088_v43  ;;  %1827 = vmatprep.subr.bf16.mxu0 %v2303_v0  ;;  %v2309_v13 = vld [vmem:[%s3375_s3 + $0x64] ss:$8 sps:$4 sm:$0xff]   ;;  %v2311_v15 = vld [vmem:[%s3375_s3 + $0x60] ss:$8 sps:$4 sm:$0xff]   ;;  %v2136_v16 = vcombine.high %v144_v11, %v148_v12  ;;  %v2135_v21 = vcombine.low %v144_v11, %v148_v12  ;;  %v57_v43 = vld [vmem:[%s3373_s1 + $0x110] sm:$0xff] }
  0x68   :  { %v2315_v26 = vld [vmem:[%s3375_s3 + $0x84] ss:$8 sps:$4 sm:$0xff]   ;;  %v2317_v28 = vld [vmem:[%s3375_s3 + $0x80] ss:$8 sps:$4 sm:$0xff]   ;;  %v2050_v48 = vcombine.high %v57_v43, %v61_v44  ;;  %v125_v24 = vld [vmem:[%s3373_s1 + $0x330] sm:$0xff] }
  0x69   :  { %v2321_v34 = vld [vmem:[%s3375_s3 + $0xa4] ss:$8 sps:$4 sm:$0xff]   ;;  %v2323_v39 = vld [vmem:[%s3375_s3 + $0xa0] ss:$8 sps:$4 sm:$0xff]   ;;  %v137_v31 = vld [vmem:[%s3373_s1 + $0x390] sm:$0xff] }
  0x6a   :  { %905 = vmatpush1.bf16.msra.mxu1 %v2087_v47  ;;  %1828 = vmatpush1.bf16.msra.mxu0 %v2305_v2  ;;  %v2327_v46 = vld [vmem:[%s3375_s3 + $0xc4] ss:$8 sps:$4 sm:$0xff]   ;;  %v2041_v47 = vcombine.low %v49_v37, %v53_v38  ;;  %v2329_v51 = vld [vmem:[%s3375_s3 + $0xc0] ss:$8 sps:$4 sm:$0xff]   ;;  %v89_v2 = vld [vmem:[%s3373_s1 + $0x210] sm:$0xff] }
  0x6b   :  { %906 = vmatprep.subr.bf16.mxu1 %v2096_v49  ;;  %1829 = vmatprep.subr.bf16.mxu0 %v2306_v7  ;;  %v65_v49 = vld [vmem:[%s3373_s1 + $0x150] sm:$0xff]  ;;  %v2333_v62 = vld [vmem:[%s3375_s3 + $0xe4] ss:$8 sps:$4 sm:$0xff]   ;;  %v2335_v0 = vld [vmem:[%s3375_s3 + $0xe0] ss:$8 sps:$4 sm:$0xff]  }
  0x6c   :  { %v2058_v54 = vcombine.high %v65_v49, %v69_v50  ;;  %v2057_v57 = vcombine.low %v65_v49, %v69_v50  ;;  %v2338_v7 = vld [vmem:[%s3375_s3 + $0xf0] ss:$8 sps:$4 sm:$0xff]   ;;  %v2341_v11 = vld [vmem:[%s3375_s3 + $0x104] ss:$8 sps:$4 sm:$0xff]  }
  0x6e   :  { %907 = vmatpush1.bf16.msra.mxu1 %v2095_v53  ;;  %1830 = vmatpush1.bf16.msra.mxu0 %v2308_v9  ;;  %v2049_v53 = vcombine.low %v57_v43, %v61_v44  ;;  %v97_v9 = vld [vmem:[%s3373_s1 + $0x250] sm:$0xff]  ;;  %v34_v43 = vld [vmem:[%s3373_s1 + $0x58] sm:$0xff] }
  0x6f   :  { %908 = vmatprep.subr.bf16.mxu1 %v2104_v55  ;;  %1831 = vmatprep.subr.bf16.mxu0 %v2309_v13  ;;  %v73_v55 = vld [vmem:[%s3373_s1 + $0x190] sm:$0xff]  ;;  %v38_v44 = vld [vmem:[%s3373_s1 + $0x78] sm:$0xff] }
  0x70   :  { %v2065_v63 = vcombine.low %v73_v55, %v77_v56  ;;  %v2027_v49 = vcombine.low %v34_v43, %v38_v44 }
  0x72   :  { %909 = vmatpush1.bf16.msra.mxu1 %v2103_v59  ;;  %1832 = vmatpush1.bf16.msra.mxu0 %v2311_v15  ;;  %v2066_v59 = vcombine.high %v73_v55, %v77_v56  ;;  %v109_v15 = vld [vmem:[%s3373_s1 + $0x2b0] sm:$0xff]  ;;  %v58_v55 = vld [vmem:[%s3373_s1 + $0x118] sm:$0xff] }
  0x73   :  { %910 = vmatprep.subr.bf16.mxu1 %v2112_v61  ;;  %1833 = vmatprep.subr.bf16.mxu0 %v2312_v20  ;;  %v85_v61 = vld [vmem:[%s3373_s1 + $0x1f0] sm:$0xff] }
  0x74   :  { %v2073_v6 = vcombine.low %v81_v60, %v85_v61  ;;  %v117_v20 = vld [vmem:[%s3373_s1 + $0x2f0] sm:$0xff] }
  0x75   :  { %v2105_v25 = vcombine.low %v113_v19, %v117_v20 }
  0x76   :  { %911 = vmatpush1.bf16.msra.mxu1 %v2111_v1  ;;  %1834 = vmatpush1.bf16.msra.mxu0 %v2314_v22  ;;  %v2074_v1 = vcombine.high %v81_v60, %v85_v61  ;;  %v2106_v22 = vcombine.high %v113_v19, %v117_v20  ;;  %v114_v20 = vld [vmem:[%s3373_s1 + $0x2d8] sm:$0xff] }
  0x77   :  { %912 = vmatprep.subr.bf16.mxu1 %v2120_v3  ;;  %1835 = vmatprep.subr.bf16.mxu0 %v2315_v26  ;;  %v93_v3 = vld [vmem:[%s3373_s1 + $0x230] sm:$0xff] }
  0x78   :  { %v2081_v12 = vcombine.low %v89_v2, %v93_v3 }
  0x7a   :  { %913 = vmatpush1.bf16.msra.mxu1 %v2119_v8  ;;  %1836 = vmatpush1.bf16.msra.mxu0 %v2317_v28  ;;  %v2082_v8 = vcombine.high %v89_v2, %v93_v3  ;;  %v133_v28 = vld [vmem:[%s3373_s1 + $0x370] sm:$0xff]  ;;  %v82_v2 = vld [vmem:[%s3373_s1 + $0x1d8] sm:$0xff] }
  0x7b   :  { %914 = vmatprep.subr.bf16.mxu1 %v2128_v10  ;;  %1837 = vmatprep.subr.bf16.mxu0 %v2318_v32  ;;  %v101_v10 = vld [vmem:[%s3373_s1 + $0x270] sm:$0xff]  ;;  %v86_v3 = vld [vmem:[%s3373_s1 + $0x1f8] sm:$0xff] }
  0x7c   :  { %v2090_v13 = vcombine.high %v97_v9, %v101_v10  ;;  %v141_v32 = vld [vmem:[%s3373_s1 + $0x3b0] sm:$0xff] }
  0x7d   :  { %v2129_v37 = vcombine.low %v137_v31, %v141_v32 }
  0x7e   :  { %915 = vmatpush1.bf16.msra.mxu1 %v2127_v14  ;;  %1838 = vmatpush1.bf16.msra.mxu0 %v2320_v33  ;;  %v105_v14 = vld [vmem:[%s3373_s1 + $0x290] sm:$0xff] }
  0x7f   :  { %916 = vmatprep.subr.bf16.mxu1 %v2136_v16  ;;  %1839 = vmatprep.subr.bf16.mxu0 %v2321_v34  ;;  %v2089_v16 = vcombine.low %v97_v9, %v101_v10  ;;  %v2098_v18 = vcombine.high %v105_v14, %v109_v15  ;;  %v2130_v34 = vcombine.high %v137_v31, %v141_v32  ;;  %v138_v32 = vld [vmem:[%s3373_s1 + $0x398] sm:$0xff] }
  0x80   :  { %v2075_v9 = vcombine.low %v82_v2, %v86_v3 }
  0x82   :  { %917 = vmatpush1.bf16.msra.mxu1 %v2135_v21  ;;  %1840 = vmatpush1.bf16.msra.mxu0 %v2323_v39  ;;  %v2097_v21 = vcombine.low %v105_v14, %v109_v15  ;;  %v26_v39 = vld [vmem:[%s3373_s1 + $0x18] sm:$0xff] }
  0x83   :  { %929 = vmatprep.subr.bf16.mxu1 %v2018_v23  ;;  %1841 = vmatprep.subr.bf16.mxu0 %v2324_v40  ;;  %v121_v23 = vld [vmem:[%s3373_s1 + $0x310] sm:$0xff]  ;;  %v30_v40 = vld [vmem:[%s3373_s1 + $0x38] sm:$0xff] }
  0x84   :  { %v2114_v26 = vcombine.high %v121_v23, %v125_v24  ;;  %v106_v15 = vld [vmem:[%s3373_s1 + $0x298] sm:$0xff] }
  0x85   :  { %919 = vmatmul.mubr.bf16.vlgmr.msra.gmra.mrb[4].mxu1 %v2657_v5 }
  0x86   :  { %930 = vmatpush1.bf16.msra.mxu1 %v2017_v27  ;;  %961 = vmatprep.mubr.bf16.mxu1 %v2573_v17  ;;  %v129_v27 = vld [vmem:[%s3373_s1 + $0x350] sm:$0xff] }
  0x87   :  { %931 = vmatprep.subr.bf16.mxu1 %v2026_v29  ;;  %1842 = vmatpush1.bf16.msra.mxu0 %v2326_v45  ;;  %v2113_v29 = vcombine.low %v121_v23, %v125_v24  ;;  %v2122_v30 = vcombine.high %v129_v27, %v133_v28  ;;  %v2121_v33 = vcombine.low %v129_v27, %v133_v28  ;;  %v122_v24 = vld [vmem:[%s3373_s1 + $0x318] sm:$0xff] }
  0x88   :  { %1843 = vmatprep.subr.bf16.mxu0 %v2327_v46  ;;  %v2019_v45 = vcombine.low %v26_v39, %v30_v40  ;;  %v2028_v46 = vcombine.high %v34_v43, %v38_v44  ;;  %v130_v28 = vld [vmem:[%s3373_s1 + $0x358] sm:$0xff]  ;;  %v3047_v44 = vld [vmem:[%s3374_s2] sm:$0xff] }
  0x8a   :  { %932 = vmatpush1.bf16.msra.mxu1 %v2025_v35  ;;  %v145_v35 = vld [vmem:[%s3373_s1 + $0x3d0] sm:$0xff] }
  0x8b   :  { %933 = vmatprep.subr.bf16.mxu1 %v2034_v36  ;;  %1844 = vmatpush1.bf16.msra.mxu0 %v2329_v51  ;;  %v149_v36 = vld [vmem:[%s3373_s1 + $0x3f0] sm:$0xff]  ;;  %v50_v51 = vld [vmem:[%s3373_s1 + $0xd8] sm:$0xff] }
  0x8c   :  { %1845 = vmatprep.subr.bf16.mxu0 %v2330_v52  ;;  %v2138_v38 = vcombine.high %v145_v35, %v149_v36  ;;  %v54_v52 = vld [vmem:[%s3373_s1 + $0xf8] sm:$0xff] }
  0x8d   :  { %v2043_v56 = vcombine.low %v50_v51, %v54_v52 }
  0x8e   :  { %934 = vmatpush1.bf16.msra.mxu1 %v2033_v41  ;;  %v2137_v41 = vcombine.low %v145_v35, %v149_v36  ;;  %v146_v36 = vld [vmem:[%s3373_s1 + $0x3d8] sm:$0xff] }
  0x8f   :  { %935 = vmatprep.subr.bf16.mxu1 %v2042_v42  ;;  %1846 = vmatpush1.bf16.msra.mxu0 %v2332_v58  ;;  %v2020_v42 = vcombine.high %v26_v39, %v30_v40  ;;  %v66_v58 = vld [vmem:[%s3373_s1 + $0x158] sm:$0xff] }
  0x90   :  { %1847 = vmatprep.subr.bf16.mxu0 %v2333_v62  ;;  %v74_v62 = vld [vmem:[%s3373_s1 + $0x198] sm:$0xff] }
  0x92   :  { %936 = vmatpush1.bf16.msra.mxu1 %v2041_v47  ;;  %v42_v47 = vld [vmem:[%s3373_s1 + $0x98] sm:$0xff] }
  0x93   :  { %937 = vmatprep.subr.bf16.mxu1 %v2050_v48  ;;  %1848 = vmatpush1.bf16.msra.mxu0 %v2335_v0  ;;  %v46_v48 = vld [vmem:[%s3373_s1 + $0xb8] sm:$0xff] }
  0x94   :  { %1849 = vmatprep.subr.bf16.mxu0 %v2336_v4  ;;  %v2036_v50 = vcombine.high %v42_v47, %v46_v48 }
  0x96   :  { %938 = vmatpush1.bf16.msra.mxu1 %v2049_v53  ;;  %v2035_v53 = vcombine.low %v42_v47, %v46_v48 }
  0x97   :  { %939 = vmatprep.subr.bf16.mxu1 %v2058_v54  ;;  %1850 = vmatpush1.bf16.msra.mxu0 %v2338_v7  ;;  %v2044_v54 = vcombine.high %v50_v51, %v54_v52  ;;  %v90_v7 = vld [vmem:[%s3373_s1 + $0x218] sm:$0xff] }
  0x98   :  { %1862 = vmatprep.subr.bf16.mxu0 %v2341_v11  ;;  %v98_v11 = vld [vmem:[%s3373_s1 + $0x258] sm:$0xff] }
  0x9a   :  { %940 = vmatpush1.bf16.msra.mxu1 %v2057_v57 }
  0x9b   :  { %941 = vmatprep.subr.bf16.mxu1 %v2066_v59  ;;  %v70_v59 = vld [vmem:[%s3373_s1 + $0x178] sm:$0xff] }
  0x9c   :  { %v2060_v61 = vcombine.high %v66_v58, %v70_v59  ;;  %v2059_v0 = vcombine.low %v66_v58, %v70_v59 }
  0x9e   :  { %942 = vmatpush1.bf16.msra.mxu1 %v2065_v63  ;;  %v78_v63 = vld [vmem:[%s3373_s1 + $0x1b8] sm:$0xff] }
  0x9f   :  { %943 = vmatprep.subr.bf16.mxu1 %v2074_v1  ;;  %v2068_v1 = vcombine.high %v74_v62, %v78_v63  ;;  %v2067_v4 = vcombine.low %v74_v62, %v78_v63  ;;  %v2342_v62 = vld [vmem:[%s3375_s3 + $0x110] ss:$8 sps:$4 sm:$0xff]   ;;  %v2347_v63 = vld [vmem:[%s3375_s3 + $0x124] ss:$8 sps:$4 sm:$0xff]  }
  0xa2   :  { %944 = vmatpush1.bf16.msra.mxu1 %v2073_v6  ;;  %v2076_v6 = vcombine.high %v82_v2, %v86_v3  ;;  %v2348_v2 = vld [vmem:[%s3375_s3 + $0x130] ss:$8 sps:$4 sm:$0xff]   ;;  %v2353_v3 = vld [vmem:[%s3375_s3 + $0x144] ss:$8 sps:$4 sm:$0xff]  }
  0xa3   :  { %945 = vmatprep.subr.bf16.mxu1 %v2082_v8  ;;  %v94_v8 = vld [vmem:[%s3373_s1 + $0x238] sm:$0xff] }
  0xa4   :  { %v2084_v10 = vcombine.high %v90_v7, %v94_v8 }
  0xa6   :  { %946 = vmatpush1.bf16.msra.mxu1 %v2081_v12  ;;  %v102_v12 = vld [vmem:[%s3373_s1 + $0x278] sm:$0xff] }
  0xa7   :  { %947 = vmatprep.subr.bf16.mxu1 %v2090_v13  ;;  %v2083_v13 = vcombine.low %v90_v7, %v94_v8  ;;  %v2092_v14 = vcombine.high %v98_v11, %v102_v12  ;;  %v2354_v7 = vld [vmem:[%s3375_s3 + $0x150] ss:$8 sps:$4 sm:$0xff]   ;;  %v2359_v8 = vld [vmem:[%s3375_s3 + $0x164] ss:$8 sps:$4 sm:$0xff]  }
  0xaa   :  { %948 = vmatpush1.bf16.msra.mxu1 %v2089_v16  ;;  %v110_v16 = vld [vmem:[%s3373_s1 + $0x2b8] sm:$0xff] }
  0xab   :  { %949 = vmatprep.subr.bf16.mxu1 %v2098_v18  ;;  %v2091_v18 = vcombine.low %v98_v11, %v102_v12  ;;  %v2100_v19 = vcombine.high %v106_v15, %v110_v16  ;;  %v2360_v11 = vld [vmem:[%s3375_s3 + $0x170] ss:$8 sps:$4 sm:$0xff]   ;;  %v2365_v12 = vld [vmem:[%s3375_s3 + $0x184] ss:$8 sps:$4 sm:$0xff]  }
  0xae   :  { %950 = vmatpush1.bf16.msra.mxu1 %v2097_v21  ;;  %v118_v21 = vld [vmem:[%s3373_s1 + $0x2f8] sm:$0xff] }
  0xaf   :  { %951 = vmatprep.subr.bf16.mxu1 %v2106_v22  ;;  %v2099_v22 = vcombine.low %v106_v15, %v110_v16  ;;  %v2108_v23 = vcombine.high %v114_v20, %v118_v21  ;;  %v2366_v15 = vld [vmem:[%s3375_s3 + $0x190] ss:$8 sps:$4 sm:$0xff]   ;;  %v2371_v16 = vld [vmem:[%s3375_s3 + $0x1a4] ss:$8 sps:$4 sm:$0xff]  }
  0xb2   :  { %952 = vmatpush1.bf16.msra.mxu1 %v2105_v25  ;;  %v126_v25 = vld [vmem:[%s3373_s1 + $0x338] sm:$0xff] }
  0xb3   :  { %953 = vmatprep.subr.bf16.mxu1 %v2114_v26  ;;  %v2107_v26 = vcombine.low %v114_v20, %v118_v21  ;;  %v2116_v27 = vcombine.high %v122_v24, %v126_v25  ;;  %v2372_v20 = vld [vmem:[%s3375_s3 + $0x1b0] ss:$8 sps:$4 sm:$0xff]   ;;  %v2377_v21 = vld [vmem:[%s3375_s3 + $0x1c4] ss:$8 sps:$4 sm:$0xff]  }
  0xb6   :  { %954 = vmatpush1.bf16.msra.mxu1 %v2113_v29  ;;  %v134_v29 = vld [vmem:[%s3373_s1 + $0x378] sm:$0xff] }
  0xb7   :  { %955 = vmatprep.subr.bf16.mxu1 %v2122_v30  ;;  %v2115_v30 = vcombine.low %v122_v24, %v126_v25  ;;  %v2124_v31 = vcombine.high %v130_v28, %v134_v29 }
  0xba   :  { %956 = vmatpush1.bf16.msra.mxu1 %v2121_v33  ;;  %v142_v33 = vld [vmem:[%s3373_s1 + $0x3b8] sm:$0xff] }
  0xbb   :  { %957 = vmatprep.subr.bf16.mxu1 %v2130_v34  ;;  %v2123_v34 = vcombine.low %v130_v28, %v134_v29  ;;  %v2132_v35 = vcombine.high %v138_v32, %v142_v33  ;;  %v2383_v28 = vld [vmem:[%s3375_s3 + $0x1e4] ss:$8 sps:$4 sm:$0xff]  }
  0xbe   :  { %958 = vmatpush1.bf16.msra.mxu1 %v2129_v37  ;;  %v150_v37 = vld [vmem:[%s3373_s1 + $0x3f8] sm:$0xff] }
  0xbf   :  { %959 = vmatprep.subr.bf16.mxu1 %v2138_v38  ;;  %v2131_v38 = vcombine.low %v138_v32, %v142_v33  ;;  %v2140_v39 = vcombine.high %v146_v36, %v150_v37  ;;  %v2139_v40 = vcombine.low %v146_v36, %v150_v37 }
  0xc2   :  { %960 = vmatpush1.bf16.msra.mxu1 %v2137_v41  ;;  %v153_v41 = vlaneseq }
  0xc3   :  { %972 = vmatprep.subr.bf16.mxu1 %v2020_v42 }
  0xc4   :  { %v3041_v42 = vshrl.u32 %v153_v41, 7  ;;  %v2384_v41 = vld [vmem:[%s3375_s3 + $0x1f0] ss:$8 sps:$4 sm:$0xff]  }
  0xc5   :  { %962 = vmatmul.mubr.bf16.vlgmr.msra.gmra.mrb[8].mxu1 %v2657_v5 }
  0xc6   :  { %973 = vmatpush1.bf16.msra.mxu1 %v2019_v45  ;;  %1004 = vmatprep.mubr.bf16.mxu1 %v2573_v17  ;;  %v62_v17 = vld [vmem:[%s3373_s1 + $0x138] sm:$0xff]  ;;  %v155_v43 = vsub.s32 0, %v3041_v42  ;;  %v159_v45 = vsub.s32 1, %v3041_v42  ;;  %v163_v24 = vsub.s32 2, %v3041_v42  ;;  %v167_v25 = vsub.s32 3, %v3041_v42 }
  0xc7   :  { %974 = vmatprep.subr.bf16.mxu1 %v2028_v46  ;;  %v2052_v57 = vcombine.high %v58_v55, %v62_v17  ;;  %v2051_v60 = vcombine.low %v58_v55, %v62_v17 }
  0xc8   :  { %v156_v46 = vrot.slane %v3047_v44, %v155_v43  ;;  %v168_v29 = vrot.slane %v3047_v44, %v167_v25 }
  0xca   :  { %975 = vmatpush1.bf16.msra.mxu1 %v2027_v49 }
  0xcb   :  { %976 = vmatprep.subr.bf16.mxu1 %v2036_v50 }
  0xce   :  { %977 = vmatpush1.bf16.msra.mxu1 %v2035_v53 }
  0xcf   :  { %978 = vmatprep.subr.bf16.mxu1 %v2044_v54 }
  0xd2   :  { %979 = vmatpush1.bf16.msra.mxu1 %v2043_v56 }
  0xd3   :  { %980 = vmatprep.subr.bf16.mxu1 %v2052_v57 }
  0xd6   :  { %981 = vmatpush1.bf16.msra.mxu1 %v2051_v60  ;;  %v2339_v60 = vld [vmem:[%s3375_s3 + $0x100] ss:$8 sps:$4 sm:$0xff]  }
  0xd7   :  { %982 = vmatprep.subr.bf16.mxu1 %v2060_v61  ;;  %v2344_v61 = vld [vmem:[%s3375_s3 + $0x114] ss:$8 sps:$4 sm:$0xff]  }
  0xda   :  { %983 = vmatpush1.bf16.msra.mxu1 %v2059_v0  ;;  %v2345_v0 = vld [vmem:[%s3375_s3 + $0x120] ss:$8 sps:$4 sm:$0xff]  }
  0xdb   :  { %984 = vmatprep.subr.bf16.mxu1 %v2068_v1  ;;  %v2350_v1 = vld [vmem:[%s3375_s3 + $0x134] ss:$8 sps:$4 sm:$0xff]  }
  0xde   :  { %985 = vmatpush1.bf16.msra.mxu1 %v2067_v4  ;;  %v2351_v4 = vld [vmem:[%s3375_s3 + $0x140] ss:$8 sps:$4 sm:$0xff]  }
  0xdf   :  { %986 = vmatprep.subr.bf16.mxu1 %v2076_v6  ;;  %v2356_v6 = vld [vmem:[%s3375_s3 + $0x154] ss:$8 sps:$4 sm:$0xff]  }
  0xe2   :  { %987 = vmatpush1.bf16.msra.mxu1 %v2075_v9  ;;  %v2357_v9 = vld [vmem:[%s3375_s3 + $0x160] ss:$8 sps:$4 sm:$0xff]  }
  0xe3   :  { %988 = vmatprep.subr.bf16.mxu1 %v2084_v10  ;;  %v2362_v10 = vld [vmem:[%s3375_s3 + $0x174] ss:$8 sps:$4 sm:$0xff]  }
  0xe6   :  { %989 = vmatpush1.bf16.msra.mxu1 %v2083_v13  ;;  %v2363_v13 = vld [vmem:[%s3375_s3 + $0x180] ss:$8 sps:$4 sm:$0xff]  }
  0xe7   :  { %990 = vmatprep.subr.bf16.mxu1 %v2092_v14  ;;  %v2368_v14 = vld [vmem:[%s3375_s3 + $0x194] ss:$8 sps:$4 sm:$0xff]  }
  0xea   :  { %991 = vmatpush1.bf16.msra.mxu1 %v2091_v18  ;;  %v2369_v18 = vld [vmem:[%s3375_s3 + $0x1a0] ss:$8 sps:$4 sm:$0xff]  }
  0xeb   :  { %992 = vmatprep.subr.bf16.mxu1 %v2100_v19  ;;  %v2374_v19 = vld [vmem:[%s3375_s3 + $0x1b4] ss:$8 sps:$4 sm:$0xff]  }
  0xee   :  { %993 = vmatpush1.bf16.msra.mxu1 %v2099_v22  ;;  %v2375_v22 = vld [vmem:[%s3375_s3 + $0x1c0] ss:$8 sps:$4 sm:$0xff]  }
  0xef   :  { %994 = vmatprep.subr.bf16.mxu1 %v2108_v23  ;;  %v2380_v23 = vld [vmem:[%s3375_s3 + $0x1d4] ss:$8 sps:$4 sm:$0xff]  }
  0xf2   :  { %995 = vmatpush1.bf16.msra.mxu1 %v2107_v26  ;;  %v2378_v26 = vld [vmem:[%s3375_s3 + $0x1d0] ss:$8 sps:$4 sm:$0xff]  }
  0xf3   :  { %996 = vmatprep.subr.bf16.mxu1 %v2116_v27  ;;  %v164_v27 = vrot.slane %v3047_v44, %v163_v24  ;;  %v2434_v24 = vld [vmem:[%s3375_s3 + $0x2f4] ss:$8 sps:$4 sm:$0xff]  }
  0xf6   :  { %997 = vmatpush1.bf16.msra.mxu1 %v2115_v30 }
  0xf7   :  { %998 = vmatprep.subr.bf16.mxu1 %v2124_v31  ;;  %v2381_v31 = vld [vmem:[%s3375_s3 + $0x1e0] ss:$8 sps:$4 sm:$0xff]  }
  0xfa   :  { %999 = vmatpush1.bf16.msra.mxu1 %v2123_v34  ;;  %v2386_v34 = vld [vmem:[%s3375_s3 + $0x1f4] ss:$8 sps:$4 sm:$0xff]  }
  0xfb   :  { %1000 = vmatprep.subr.bf16.mxu1 %v2132_v35 }
  0xfe   :  { %1001 = vmatpush1.bf16.msra.mxu1 %v2131_v38 }
  0xff   :  { %1002 = vmatprep.subr.bf16.mxu1 %v2140_v39 }
 0x102   :  { %1003 = vmatpush1.bf16.msra.mxu1 %v2139_v40 }
 0x105   :  { %1005 = vmatmul.mubr.bf16.vlgmr.msra.gmra.mrb[12].mxu1 %v2657_v5  ;;  %v160_v5 = vrot.slane %v3047_v44, %v159_v45 }
 0x118   :  { %v877_v47 = vpop.f32.mrb[0].mxu1 }
 0x119   :  { %v878_v48 = vadd.f32 %v877_v47, %v156_v46  ;;  %v879_v49 = vpop.f32.mrb[1].mxu1 }
 0x11a   :  { %v880_v50 = vadd.f32 %v879_v49, %v160_v5  ;;  %v881_v51 = vpop.f32.mrb[2].mxu1 }
 0x11b   :  { %v1015_v52 = vmax.f32 %v878_v48, 0.0  ;;  %v882_v53 = vadd.f32 %v881_v51, %v156_v46  ;;  %v883_v54 = vpop.f32.mrb[3].mxu1  ;;  %v2387_v51 = vld [vmem:[%s3375_s3 + $0x200] ss:$8 sps:$4 sm:$0xff]  }
 0x11c   :  { %v884_v55 = vadd.f32 %v883_v54, %v160_v5  ;;  %v1016_v56 = vmax.f32 %v880_v50, 0.0  ;;  %v2389_v5 = vld [vmem:[%s3375_s3 + $0x204] ss:$8 sps:$4 sm:$0xff]  }
 0x11d   :  { %v1023_v17 = vmax.f32 %v882_v53, 0.0  ;;  %v2390_v53 = vld [vmem:[%s3375_s3 + $0x210] ss:$8 sps:$4 sm:$0xff]   ;;  %v2395_v54 = vld [vmem:[%s3375_s3 + $0x224] ss:$8 sps:$4 sm:$0xff]  }
 0x11e   :  { %v1024_v57 = vmax.f32 %v884_v55, 0.0  ;;  %v2393_v55 = vld [vmem:[%s3375_s3 + $0x220] ss:$8 sps:$4 sm:$0xff]  }
 0x11f   :  { %v1031_v58 = vpack.c.bf16 %v1023_v17, %v1015_v52  ;;  %v2392_v52 = vld [vmem:[%s3375_s3 + $0x214] ss:$8 sps:$4 sm:$0xff]  }
 0x120   :  { %v1032_v59 = vpack.c.bf16 %v1024_v57, %v1016_v56  ;;  %v2398_v17 = vld [vmem:[%s3375_s3 + $0x234] ss:$8 sps:$4 sm:$0xff]   ;;  %v2396_v56 = vld [vmem:[%s3375_s3 + $0x230] ss:$8 sps:$4 sm:$0xff]   ;;  %v2401_v57 = vld [vmem:[%s3375_s3 + $0x244] ss:$8 sps:$4 sm:$0xff]  }
 0x122   :  { %1851 = vmatprep.mubr.bf16.mxu0 %v1032_v59  ;;  %v2404_v59 = vld [vmem:[%s3375_s3 + $0x254] ss:$8 sps:$4 sm:$0xff]  }
 0x123   :  { %1852 = vmatmul.mubr.bf16.vlgmr.msra.gmra.mrb[0].mxu0 %v1031_v58  ;;  %v2399_v58 = vld [vmem:[%s3375_s3 + $0x240] ss:$8 sps:$4 sm:$0xff]  }
 0x124   :  { %1863 = vmatpush1.bf16.msra.mxu0 %v2339_v60  ;;  %v2402_v60 = vld [vmem:[%s3375_s3 + $0x250] ss:$8 sps:$4 sm:$0xff]  }
 0x125   :  { %1864 = vmatprep.subr.bf16.mxu0 %v2344_v61  ;;  %v2407_v61 = vld [vmem:[%s3375_s3 + $0x264] ss:$8 sps:$4 sm:$0xff]  }
 0x128   :  { %1865 = vmatpush1.bf16.msra.mxu0 %v2342_v62  ;;  %v2405_v62 = vld [vmem:[%s3375_s3 + $0x260] ss:$8 sps:$4 sm:$0xff]  }
 0x129   :  { %1866 = vmatprep.subr.bf16.mxu0 %v2347_v63  ;;  %v2410_v63 = vld [vmem:[%s3375_s3 + $0x274] ss:$8 sps:$4 sm:$0xff]  }
 0x12c   :  { %1867 = vmatpush1.bf16.msra.mxu0 %v2345_v0  ;;  %v2408_v0 = vld [vmem:[%s3375_s3 + $0x270] ss:$8 sps:$4 sm:$0xff]  }
 0x12d   :  { %1868 = vmatprep.subr.bf16.mxu0 %v2350_v1  ;;  %v2413_v1 = vld [vmem:[%s3375_s3 + $0x284] ss:$8 sps:$4 sm:$0xff]  }
 0x130   :  { %1869 = vmatpush1.bf16.msra.mxu0 %v2348_v2  ;;  %v2411_v2 = vld [vmem:[%s3375_s3 + $0x280] ss:$8 sps:$4 sm:$0xff]  }
 0x131   :  { %1870 = vmatprep.subr.bf16.mxu0 %v2353_v3  ;;  %v2416_v3 = vld [vmem:[%s3375_s3 + $0x294] ss:$8 sps:$4 sm:$0xff]  }
 0x134   :  { %1871 = vmatpush1.bf16.msra.mxu0 %v2351_v4  ;;  %v2414_v4 = vld [vmem:[%s3375_s3 + $0x290] ss:$8 sps:$4 sm:$0xff]  }
 0x135   :  { %1872 = vmatprep.subr.bf16.mxu0 %v2356_v6  ;;  %v2419_v6 = vld [vmem:[%s3375_s3 + $0x2a4] ss:$8 sps:$4 sm:$0xff]  }
 0x138   :  { %1873 = vmatpush1.bf16.msra.mxu0 %v2354_v7  ;;  %v2417_v7 = vld [vmem:[%s3375_s3 + $0x2a0] ss:$8 sps:$4 sm:$0xff]  }
 0x139   :  { %1874 = vmatprep.subr.bf16.mxu0 %v2359_v8  ;;  %v2422_v8 = vld [vmem:[%s3375_s3 + $0x2b4] ss:$8 sps:$4 sm:$0xff]  }
 0x13c   :  { %1875 = vmatpush1.bf16.msra.mxu0 %v2357_v9  ;;  %v2420_v9 = vld [vmem:[%s3375_s3 + $0x2b0] ss:$8 sps:$4 sm:$0xff]  }
 0x13d   :  { %1876 = vmatprep.subr.bf16.mxu0 %v2362_v10  ;;  %v2425_v10 = vld [vmem:[%s3375_s3 + $0x2c4] ss:$8 sps:$4 sm:$0xff]  }
 0x140   :  { %1877 = vmatpush1.bf16.msra.mxu0 %v2360_v11  ;;  %v2423_v11 = vld [vmem:[%s3375_s3 + $0x2c0] ss:$8 sps:$4 sm:$0xff]  }
 0x141   :  { %1878 = vmatprep.subr.bf16.mxu0 %v2365_v12  ;;  %v2428_v12 = vld [vmem:[%s3375_s3 + $0x2d4] ss:$8 sps:$4 sm:$0xff]  }
 0x144   :  { %1879 = vmatpush1.bf16.msra.mxu0 %v2363_v13  ;;  %v171_v13 = vsub.s32 4, %v3041_v42 }
 0x145   :  { %1880 = vmatprep.subr.bf16.mxu0 %v2368_v14  ;;  %v175_v14 = vsub.s32 5, %v3041_v42 }
 0x148   :  { %1881 = vmatpush1.bf16.msra.mxu0 %v2366_v15  ;;  %v2426_v15 = vld [vmem:[%s3375_s3 + $0x2d0] ss:$8 sps:$4 sm:$0xff]  }
 0x149   :  { %1882 = vmatprep.subr.bf16.mxu0 %v2371_v16  ;;  %v172_v16 = vrot.slane %v3047_v44, %v171_v13  ;;  %v2482_v13 = vld [vmem:[%s3375_s3 + $0x3f4] ss:$8 sps:$4 sm:$0xff]  }
 0x14c   :  { %1883 = vmatpush1.bf16.msra.mxu0 %v2369_v18  ;;  %v2431_v18 = vld [vmem:[%s3375_s3 + $0x2e4] ss:$8 sps:$4 sm:$0xff]  }
 0x14d   :  { %1884 = vmatprep.subr.bf16.mxu0 %v2374_v19  ;;  %v176_v19 = vrot.slane %v3047_v44, %v175_v14 }
 0x150   :  { %1885 = vmatpush1.bf16.msra.mxu0 %v2372_v20 }
 0x151   :  { %1886 = vmatprep.subr.bf16.mxu0 %v2377_v21  ;;  %v2429_v21 = vld [vmem:[%s3375_s3 + $0x2e0] ss:$8 sps:$4 sm:$0xff]  }
 0x154   :  { %1887 = vmatpush1.bf16.msra.mxu0 %v2375_v22 }
 0x155   :  { %1888 = vmatprep.subr.bf16.mxu0 %v2380_v23 }
 0x158   :  { %v920_v30 = vpop.f32.mrb[4].mxu1  ;;  %1889 = vmatpush1.bf16.msra.mxu0 %v2378_v26 }
 0x159   :  { %v921_v32 = vadd.f32 %v920_v30, %v164_v27  ;;  %v922_v33 = vpop.f32.mrb[5].mxu1  ;;  %1890 = vmatprep.subr.bf16.mxu0 %v2383_v28 }
 0x15a   :  { %v923_v35 = vadd.f32 %v922_v33, %v168_v29  ;;  %v924_v36 = vpop.f32.mrb[6].mxu1  ;;  %v2437_v33 = vld [vmem:[%s3375_s3 + $0x304] ss:$8 sps:$4 sm:$0xff]  }
 0x15b   :  { %v1017_v37 = vmax.f32 %v921_v32, 0.0  ;;  %v925_v38 = vadd.f32 %v924_v36, %v164_v27  ;;  %v926_v39 = vpop.f32.mrb[7].mxu1 }
 0x15c   :  { %v927_v40 = vadd.f32 %v926_v39, %v168_v29  ;;  %1891 = vmatpush1.bf16.msra.mxu0 %v2381_v31  ;;  %v1018_v47 = vmax.f32 %v923_v35, 0.0  ;;  %v2432_v31 = vld [vmem:[%s3375_s3 + $0x2f0] ss:$8 sps:$4 sm:$0xff]   ;;  %v2440_v39 = vld [vmem:[%s3375_s3 + $0x314] ss:$8 sps:$4 sm:$0xff]  }
 0x15d   :  { %v1025_v46 = vmax.f32 %v925_v38, 0.0  ;;  %1892 = vmatprep.subr.bf16.mxu0 %v2386_v34  ;;  %v2435_v38 = vld [vmem:[%s3375_s3 + $0x300] ss:$8 sps:$4 sm:$0xff]  }
 0x15e   :  { %v1026_v48 = vmax.f32 %v927_v40, 0.0  ;;  %v2438_v40 = vld [vmem:[%s3375_s3 + $0x310] ss:$8 sps:$4 sm:$0xff]  }
 0x15f   :  { %v1033_v49 = vpack.c.bf16 %v1025_v46, %v1017_v37  ;;  %v2441_v46 = vld [vmem:[%s3375_s3 + $0x320] ss:$8 sps:$4 sm:$0xff]  }
 0x160   :  { %v1034_v50 = vpack.c.bf16 %v1026_v48, %v1018_v47  ;;  %1893 = vmatpush1.bf16.msra.mxu0 %v2384_v41  ;;  %v2443_v41 = vld [vmem:[%s3375_s3 + $0x324] ss:$8 sps:$4 sm:$0xff]   ;;  %v2444_v47 = vld [vmem:[%s3375_s3 + $0x330] ss:$8 sps:$4 sm:$0xff]  }
 0x161   :  { %1905 = vmatprep.subr.bf16.mxu0 %v2389_v5  ;;  %v2446_v5 = vld [vmem:[%s3375_s3 + $0x334] ss:$8 sps:$4 sm:$0xff]   ;;  %v2449_v48 = vld [vmem:[%s3375_s3 + $0x344] ss:$8 sps:$4 sm:$0xff]  }
 0x162   :  { %1894 = vmatprep.mubr.bf16.mxu0 %v1034_v50  ;;  %v2452_v50 = vld [vmem:[%s3375_s3 + $0x354] ss:$8 sps:$4 sm:$0xff]  }
 0x163   :  { %1895 = vmatmul.mubr.bf16.vlgmr.msra.gmra.mrb[0].mxu0 %v1033_v49  ;;  %v2447_v49 = vld [vmem:[%s3375_s3 + $0x340] ss:$8 sps:$4 sm:$0xff]  }
 0x164   :  { %1906 = vmatpush1.bf16.msra.mxu0 %v2387_v51  ;;  %v2450_v51 = vld [vmem:[%s3375_s3 + $0x350] ss:$8 sps:$4 sm:$0xff]  }
 0x165   :  { %1907 = vmatprep.subr.bf16.mxu0 %v2392_v52  ;;  %v2455_v52 = vld [vmem:[%s3375_s3 + $0x364] ss:$8 sps:$4 sm:$0xff]  }
 0x168   :  { %1908 = vmatpush1.bf16.msra.mxu0 %v2390_v53  ;;  %v2453_v53 = vld [vmem:[%s3375_s3 + $0x360] ss:$8 sps:$4 sm:$0xff]  }
 0x169   :  { %1909 = vmatprep.subr.bf16.mxu0 %v2395_v54  ;;  %v2458_v54 = vld [vmem:[%s3375_s3 + $0x374] ss:$8 sps:$4 sm:$0xff]  }
 0x16c   :  { %1910 = vmatpush1.bf16.msra.mxu0 %v2393_v55  ;;  %v2456_v55 = vld [vmem:[%s3375_s3 + $0x370] ss:$8 sps:$4 sm:$0xff]  }
 0x16d   :  { %1911 = vmatprep.subr.bf16.mxu0 %v2398_v17  ;;  %v2461_v17 = vld [vmem:[%s3375_s3 + $0x384] ss:$8 sps:$4 sm:$0xff]  }
 0x170   :  { %1912 = vmatpush1.bf16.msra.mxu0 %v2396_v56  ;;  %v2459_v56 = vld [vmem:[%s3375_s3 + $0x380] ss:$8 sps:$4 sm:$0xff]  }
 0x171   :  { %1913 = vmatprep.subr.bf16.mxu0 %v2401_v57  ;;  %v2464_v57 = vld [vmem:[%s3375_s3 + $0x394] ss:$8 sps:$4 sm:$0xff]  }
 0x174   :  { %1914 = vmatpush1.bf16.msra.mxu0 %v2399_v58  ;;  %v2462_v58 = vld [vmem:[%s3375_s3 + $0x390] ss:$8 sps:$4 sm:$0xff]  }
 0x175   :  { %1915 = vmatprep.subr.bf16.mxu0 %v2404_v59  ;;  %v2467_v59 = vld [vmem:[%s3375_s3 + $0x3a4] ss:$8 sps:$4 sm:$0xff]  }
 0x178   :  { %1916 = vmatpush1.bf16.msra.mxu0 %v2402_v60  ;;  %v2465_v60 = vld [vmem:[%s3375_s3 + $0x3a0] ss:$8 sps:$4 sm:$0xff]  }
 0x179   :  { %1917 = vmatprep.subr.bf16.mxu0 %v2407_v61  ;;  %v2470_v61 = vld [vmem:[%s3375_s3 + $0x3b4] ss:$8 sps:$4 sm:$0xff]  }
 0x17c   :  { %1918 = vmatpush1.bf16.msra.mxu0 %v2405_v62  ;;  %v2468_v62 = vld [vmem:[%s3375_s3 + $0x3b0] ss:$8 sps:$4 sm:$0xff]  }
 0x17d   :  { %1919 = vmatprep.subr.bf16.mxu0 %v2410_v63  ;;  %v2473_v63 = vld [vmem:[%s3375_s3 + $0x3c4] ss:$8 sps:$4 sm:$0xff]  }
 0x180   :  { %1920 = vmatpush1.bf16.msra.mxu0 %v2408_v0  ;;  %v2471_v0 = vld [vmem:[%s3375_s3 + $0x3c0] ss:$8 sps:$4 sm:$0xff]  }
 0x181   :  { %1921 = vmatprep.subr.bf16.mxu0 %v2413_v1  ;;  %v2476_v1 = vld [vmem:[%s3375_s3 + $0x3d4] ss:$8 sps:$4 sm:$0xff]  }
 0x184   :  { %1922 = vmatpush1.bf16.msra.mxu0 %v2411_v2  ;;  %v179_v2 = vsub.s32 6, %v3041_v42 }
 0x185   :  { %1923 = vmatprep.subr.bf16.mxu0 %v2416_v3  ;;  %v183_v3 = vsub.s32 7, %v3041_v42 }
 0x188   :  { %1924 = vmatpush1.bf16.msra.mxu0 %v2414_v4  ;;  %v2474_v4 = vld [vmem:[%s3375_s3 + $0x3d0] ss:$8 sps:$4 sm:$0xff]  }
 0x189   :  { %1925 = vmatprep.subr.bf16.mxu0 %v2419_v6  ;;  %v180_v6 = vrot.slane %v3047_v44, %v179_v2 }
 0x18c   :  { %1926 = vmatpush1.bf16.msra.mxu0 %v2417_v7  ;;  %v2479_v7 = vld [vmem:[%s3375_s3 + $0x3e4] ss:$8 sps:$4 sm:$0xff]  }
 0x18d   :  { %1927 = vmatprep.subr.bf16.mxu0 %v2422_v8  ;;  %v184_v8 = vrot.slane %v3047_v44, %v183_v3  ;;  %v2480_v44 = vld [vmem:[%s3375_s3 + $0x3f0] ss:$8 sps:$4 sm:$0xff]  }
 0x190   :  { %1928 = vmatpush1.bf16.msra.mxu0 %v2420_v9 }
 0x191   :  { %1929 = vmatprep.subr.bf16.mxu0 %v2425_v10  ;;  %v2477_v10 = vld [vmem:[%s3375_s3 + $0x3e0] ss:$8 sps:$4 sm:$0xff]   ;;  %s2507_s3 = smov [#allocation2]  }
 0x192   :  { %s2000_s7 = sshll.u32 %s2507_s3, 4  ;;  %s2001_s7 = int_to_ptr.vmem [resolvable:$true] %s2000_s7 }
 0x193   :  { %p2488_p1 = scmp.lt.s32.totalorder %s2001_s7, %s2001_s7 }
 0x194   :  { %1930 = vmatpush1.bf16.msra.mxu0 %v2423_v11 }
 0x195   :  { %1931 = vmatprep.subr.bf16.mxu0 %v2428_v12 }
 0x198   :  { %v963_v20 = vpop.f32.mrb[8].mxu1  ;;  %1932 = vmatpush1.bf16.msra.mxu0 %v2426_v15 }
 0x199   :  { %v964_v22 = vadd.f32 %v963_v20, %v172_v16  ;;  %v965_v23 = vpop.f32.mrb[9].mxu1  ;;  %1933 = vmatprep.subr.bf16.mxu0 %v2431_v18 }
 0x19a   :  { %v966_v25 = vadd.f32 %v965_v23, %v176_v19  ;;  %v967_v26 = vpop.f32.mrb[10].mxu1 }
 0x19b   :  { %v1019_v27 = vmax.f32 %v964_v22, 0.0  ;;  %v968_v28 = vadd.f32 %v967_v26, %v172_v16  ;;  %v969_v29 = vpop.f32.mrb[11].mxu1  ;;  %v1167_v26 = vld [vmem:[%s3376_s4] sm:$0x3]  ;;  %s2483_s4 = scalar_lea.vmem %s2001_s7, 512 }
 0x19c   :  { %v970_v30 = vadd.f32 %v969_v29, %v176_v19  ;;  %1934 = vmatpush1.bf16.msra.mxu0 %v2429_v21  ;;  %v1020_v34 = vmax.f32 %v966_v25, 0.0  ;;  %p2484_p0 = scmp.ne.s32.totalorder %s2001_s7, %s2483_s4  ;;  %p2489_p2 = scmp.lt.s32.totalorder %s2483_s4, %s2483_s4 }
 0x19d   :  { %v1027_v32 = vmax.f32 %v968_v28, 0.0  ;;  %1935 = vmatprep.subr.bf16.mxu0 %v2434_v24  ;;  %v1176_v28 = vrot.slane %v1167_v26, %v159_v45 }
 0x19e   :  { %v1028_v35 = vmax.f32 %v970_v30, 0.0  ;;  %p2490_p3 = por %p2489_p2, %p2488_p1 }
 0x19f   :  { %v1035_v36 = vpack.c.bf16 %v1027_v32, %v1019_v27  ;;  %v1172_v27 = vrot.slane %v1167_v26, %v155_v43 }
 0x1a0   :  { %v1036_v37 = vpack.c.bf16 %v1028_v35, %v1020_v34  ;;  %1936 = vmatpush1.bf16.msra.mxu0 %v2432_v31  ;;  %p2491_p4 = pnand %p2490_p3, %p2484_p0 }
 0x1a1   :  { %1948 = vmatprep.subr.bf16.mxu0 %v2437_v33 }
 0x1a2   :  { %1937 = vmatprep.mubr.bf16.mxu0 %v1036_v37 }
 0x1a3   :  { %1938 = vmatmul.mubr.bf16.vlgmr.msra.gmra.mrb[0].mxu0 %v1035_v36 }
 0x1a4   :  { %1949 = vmatpush1.bf16.msra.mxu0 %v2435_v38 }
 0x1a5   :  { %1950 = vmatprep.subr.bf16.mxu0 %v2440_v39 }
 0x1a8   :  { %1951 = vmatpush1.bf16.msra.mxu0 %v2438_v40 }
 0x1a9   :  { %1952 = vmatprep.subr.bf16.mxu0 %v2443_v41 }
 0x1ac   :  { %1953 = vmatpush1.bf16.msra.mxu0 %v2441_v46 }
 0x1ad   :  { %1954 = vmatprep.subr.bf16.mxu0 %v2446_v5 }
 0x1b0   :  { %1955 = vmatpush1.bf16.msra.mxu0 %v2444_v47 }
 0x1b1   :  { %1956 = vmatprep.subr.bf16.mxu0 %v2449_v48 }
 0x1b4   :  { %1957 = vmatpush1.bf16.msra.mxu0 %v2447_v49 }
 0x1b5   :  { %1958 = vmatprep.subr.bf16.mxu0 %v2452_v50 }
 0x1b8   :  { %1959 = vmatpush1.bf16.msra.mxu0 %v2450_v51 }
 0x1b9   :  { %1960 = vmatprep.subr.bf16.mxu0 %v2455_v52 }
 0x1bc   :  { %1961 = vmatpush1.bf16.msra.mxu0 %v2453_v53 }
 0x1bd   :  { %1962 = vmatprep.subr.bf16.mxu0 %v2458_v54 }
 0x1c0   :  { %1963 = vmatpush1.bf16.msra.mxu0 %v2456_v55 }
 0x1c1   :  { %1964 = vmatprep.subr.bf16.mxu0 %v2461_v17 }
 0x1c4   :  { %1965 = vmatpush1.bf16.msra.mxu0 %v2459_v56 }
 0x1c5   :  { %1966 = vmatprep.subr.bf16.mxu0 %v2464_v57 }
 0x1c8   :  { %1967 = vmatpush1.bf16.msra.mxu0 %v2462_v58 }
 0x1c9   :  { %1968 = vmatprep.subr.bf16.mxu0 %v2467_v59 }
 0x1cc   :  { %1969 = vmatpush1.bf16.msra.mxu0 %v2465_v60 }
 0x1cd   :  { %1970 = vmatprep.subr.bf16.mxu0 %v2470_v61 }
 0x1d0   :  { %1971 = vmatpush1.bf16.msra.mxu0 %v2468_v62 }
 0x1d1   :  { %1972 = vmatprep.subr.bf16.mxu0 %v2473_v63 }
 0x1d4   :  { %1973 = vmatpush1.bf16.msra.mxu0 %v2471_v0 }
 0x1d5   :  { %1974 = vmatprep.subr.bf16.mxu0 %v2476_v1 }
 0x1d8   :  { %v1006_v9 = vpop.f32.mrb[12].mxu1  ;;  %1975 = vmatpush1.bf16.msra.mxu0 %v2474_v4 }
 0x1d9   :  { %v1007_v11 = vadd.f32 %v1006_v9, %v180_v6  ;;  %v1008_v12 = vpop.f32.mrb[13].mxu1  ;;  %1976 = vmatprep.subr.bf16.mxu0 %v2479_v7 }
 0x1da   :  { %v1009_v14 = vadd.f32 %v1008_v12, %v184_v8  ;;  %v1010_v15 = vpop.f32.mrb[14].mxu1 }
 0x1db   :  { %v1011_v16 = vadd.f32 %v1010_v15, %v180_v6  ;;  %v1012_v18 = vpop.f32.mrb[15].mxu1  ;;  %v1021_v20 = vmax.f32 %v1007_v11, 0.0 }
 0x1dc   :  { %v1013_v19 = vadd.f32 %v1012_v18, %v184_v8  ;;  %1977 = vmatpush1.bf16.msra.mxu0 %v2477_v10  ;;  %v1022_v22 = vmax.f32 %v1009_v14, 0.0 }
 0x1dd   :  { %v1029_v21 = vmax.f32 %v1011_v16, 0.0  ;;  %1978 = vmatprep.subr.bf16.mxu0 %v2482_v13 }
 0x1de   :  { %v1030_v23 = vmax.f32 %v1013_v19, 0.0 }
 0x1df   :  { %v1037_v24 = vpack.c.bf16 %v1029_v21, %v1021_v20 }
 0x1e0   :  { %v1038_v25 = vpack.c.bf16 %v1030_v23, %v1022_v22  ;;  %1979 = vmatpush1.bf16.msra.mxu0 %v2480_v44 }
 0x1e2   :  { %1980 = vmatprep.mubr.bf16.mxu0 %v1038_v25 }
 0x1e3   :  { %1981 = vmatmul.mubr.bf16.vlgmr.msra.gmra.mrb[0].mxu0 %v1037_v24 }
 0x2b6   :  { %v1982_v29 = vpop.f32.mrb[0].mxu0 }
 0x2b7   :  { %v2269_v30 = vadd.f32 %v1982_v29, %v1172_v27  ;;  %v1984_v31 = vpop.f32.mrb[1].mxu0 }
 0x2b8   :  { %v2270_v32 = vadd.f32 %v1984_v31, %v1176_v28  ;;  %v1986_v33 = vpop.f32.mrb[2].mxu0 }
 0x2b9   :  { %1991 = vst [vmem:[#allocation2] sm:$0xff] %v2269_v30  ;;  %v2271_v34 = vadd.f32 %v1986_v33, %v1172_v27  ;;  %v1988_v35 = vpop.f32.mrb[3].mxu0 }
 0x2ba   :  { %1992 = vst [vmem:[#allocation2 + $0x8] sm:$0xff] %v2270_v32  ;;  %v2272_v36 = vadd.f32 %v1988_v35, %v1176_v28 }
 0x2bb   :  { %1993 = vst [vmem:[#allocation2 + $0x10] sm:$0xff] %v2271_v34 }
 0x2bc   :  { %1994 = vst [vmem:[#allocation2 + $0x18] sm:$0xff] %v2272_v36 }
 0x2bd   :  { %2494 = shalt.err (!%p2491_p4)
}
 0x2be   :  { %s2495_s10 = scalar_lea.hbm %s3377_s5, 512 }
 0x2bf   :  { %p2496_p5 = scmp.ne.s32.totalorder %s3377_s5, %s2495_s10  ;;  %p2499_p6 = scmp.lt.u32.totalorder %s2495_s10, %s3377_s5 }
 0x2c1   :  { %p2501_p7 = pnand %p2499_p6, %p2496_p5 }
 0x2c3   :  { %2504 = shalt.err (!%p2501_p7)
}
 0x2c4   :  { %s2508_s13 = smov 256   ;;  %s2509_s14 = smov 16  }
 0x2c5   :  { %2006 = dma.vmem_to_hbm [thread:$0]  %s2001_s7, 512, %s3377_s5, [#allocation3], %s2508_s13, %s2508_s13, %s2509_s14  }
 0x2c6   :  { %2505 = dma.done.wait [#allocation3], 512  }
 0x2c7   :  { %2506 = vsyncadd [#allocation3], 4294966784 }
 0x2c8   :  { %2010 = vsyncpa [#allocation3], 1 }

</bundles_post_ra>
